<compile_context>
chip_gen: v5e
topology: v5e:2x2
jax: 0.10.0
libtpu: 0.0.40
codegen_flags: <defaults>
</compile_context>

<pallas_src>
import functools

import jax
import jax.numpy as jnp
from jax.experimental import pallas as pl
from jax.experimental.pallas import tpu as pltpu

LN_EPS = 1e-5


def _swin_layer_kernel(x_ref, p_ref, wt_ref, o_ref, *, use_bf16_mxu):
    # x_ref: (TM, D) tile of tokens.
    # p_ref: (8, D) fused params: rows = [g1, b1, g2, b2, ffn_bias, 0, 0, 0].
    # wt_ref: (D, D) = W^T (already transposed), f32 or bf16.
    x = x_ref[...].astype(jnp.float32)
    p = p_ref[...].astype(jnp.float32)
    g1, b1 = p[0:1, :], p[1:2, :]
    g2, b2 = p[2:3, :], p[3:4, :]
    bias = p[4:5, :]

    # ---- atten_norm (LayerNorm over embed dim) ----
    mu1 = jnp.mean(x, axis=-1, keepdims=True)
    d1 = x - mu1
    var1 = jnp.mean(d1 * d1, axis=-1, keepdims=True)
    ln1 = d1 * jax.lax.rsqrt(var1 + LN_EPS) * g1 + b1

    # ---- atten (SwinBlock is identity) + residual ----
    x1 = ln1 + x

    # ---- ffn_norm (LayerNorm over embed dim) ----
    mu2 = jnp.mean(x1, axis=-1, keepdims=True)
    d2 = x1 - mu2
    var2 = jnp.mean(d2 * d2, axis=-1, keepdims=True)
    ln2 = d2 * jax.lax.rsqrt(var2 + LN_EPS) * g2 + b2

    # ---- ffn (Linear: y = x @ W^T + b) + residual ----
    if use_bf16_mxu:
        y = jnp.dot(ln2.astype(jnp.bfloat16), wt_ref[...],
                    preferred_element_type=jnp.float32)
    else:
        y = jnp.dot(ln2, wt_ref[...].astype(jnp.float32),
                    preferred_element_type=jnp.float32)
    y = y + bias

    o_ref[...] = (y + x1).astype(o_ref.dtype)


def _choose_tile_rows(rows, d, elem_bytes=4, vmem_budget_bytes=24 * 1024 * 1024):
    """Largest power-of-two row tile (>=8, <=2048) whose double-buffered
    input + output tiles stay within the VMEM budget."""
    tile = 8
    while tile < 2048 and tile < rows:
        nxt = tile * 2
        # 2 double-buffered slots each for the input and output tile (f32).
        if 4 * nxt * d * elem_bytes > vmem_budget_bytes:
            break
        tile = nxt
    return tile


@functools.partial(jax.jit, static_argnames=("tile_rows", "use_bf16_mxu"))
def swin_layer_forward(x, params, *, tile_rows=None, use_bf16_mxu=False):
    """x: (B, N, D) float32. params: dict of LN / Linear parameters."""
    B, N, D = x.shape
    rows = B * N
    if tile_rows is None:
        tile_rows = _choose_tile_rows(rows, D)
    n_tiles = pl.cdiv(rows, tile_rows)
    rows_p = n_tiles * tile_rows

    x2 = x.reshape(rows, D)
    if rows_p != rows:
        # Pad to a tile multiple; padded rows are sliced off after the call.
        x2 = jnp.pad(x2, ((0, rows_p - rows), (0, 0)))

    # Fuse the five (D,) parameter vectors into one (8, D) block -> single DMA.
    zero = jnp.zeros((D,), jnp.float32)
    pvec = jnp.stack([
        params["ln1_gamma"], params["ln1_beta"],
        params["ln2_gamma"], params["ln2_beta"],
        params["ffn_bias"], zero, zero, zero,
    ]).astype(jnp.float32)

    # W^T pre-transposed at parameter-creation time (no per-call transpose).
    wt = params.get("ffn_weight_t")
    if wt is None:
        wt = params["ffn_weight"].T
    wt = wt.astype(jnp.bfloat16 if use_bf16_mxu else jnp.float32)
    wt_bytes = wt.dtype.itemsize
    x_bytes = x.dtype.itemsize

    # Advisory cost for XLA scheduling around the custom call.
    cost = pl.CostEstimate(
        flops=2 * rows_p * D * D + 12 * rows_p * D,
        transcendentals=2 * rows_p,
        bytes_accessed=2 * rows_p * D * x_bytes + D * D * wt_bytes + 8 * D * 4,
    )

    # Explicit VMEM budget (double-buffered tiles + weight + fused params).
    vmem_need = (4 * tile_rows * D * 4) + (2 * D * D * wt_bytes) + (2 * 8 * D * 4)
    vmem_limit = int(min(max(2 * vmem_need, 32 * 1024 * 1024), 64 * 1024 * 1024))

    row_spec = pl.BlockSpec((tile_rows, D), lambda i: (i, 0))

    out = pl.pallas_call(
        functools.partial(_swin_layer_kernel, use_bf16_mxu=use_bf16_mxu),
        out_shape=jax.ShapeDtypeStruct((rows_p, D), x.dtype),
        grid_spec=pltpu.PrefetchScalarGridSpec(
            num_scalar_prefetch=0,
            grid=(n_tiles,),
            in_specs=[
                row_spec,                                 # token tile
                pl.BlockSpec((8, D), lambda i: (0, 0)),   # fused LN/bias params
                pl.BlockSpec((D, D), lambda i: (0, 0)),   # W^T (constant index)
            ],
            out_specs=row_spec,
        ),
        compiler_params=pltpu.CompilerParams(
            dimension_semantics=("parallel",),
            vmem_limit_bytes=vmem_limit),
        cost_estimate=cost,
    )(x2, pvec, wt)

    return out[:rows].reshape(B, N, D)


def _reference(x, params):
    """Pure-JAX reference matching the PyTorch forward exactly."""
    def ln(v, g, b):
        mu = jnp.mean(v, axis=-1, keepdims=True)
        var = jnp.mean((v - mu) ** 2, axis=-1, keepdims=True)
        return (v - mu) / jnp.sqrt(var + LN_EPS) * g + b

    h = x
    x = ln(x, params["ln1_gamma"], params["ln1_beta"])
    x = x            # SwinBlock is identity
    x = x + h
    h = x
    x = ln(x, params["ln2_gamma"], params["ln2_beta"])
    x = x @ params["ffn_weight"].T + params["ffn_bias"]
    x = x + h
    return x


def make_params(key, embed_dim):
    k_w, k_b = jax.random.split(key)
    bound = 1.0 / jnp.sqrt(embed_dim)
    w = jax.random.uniform(k_w, (embed_dim, embed_dim), jnp.float32, -bound, bound)
    return {
        # nn.LayerNorm default init: gamma=1, beta=0
        "ln1_gamma": jnp.ones((embed_dim,), jnp.float32),
        "ln1_beta": jnp.zeros((embed_dim,), jnp.float32),
        "ln2_gamma": jnp.ones((embed_dim,), jnp.float32),
        "ln2_beta": jnp.zeros((embed_dim,), jnp.float32),
        # nn.Linear init: uniform(-1/sqrt(in), 1/sqrt(in)); weight (out, in)
        "ffn_weight": w,
        # pre-transposed copy used by the kernel (avoids a per-call transpose)
        "ffn_weight_t": w.T,
        "ffn_bias": jax.random.uniform(
            k_b, (embed_dim,), jnp.float32, -bound, bound),
    }


if __name__ == "__main__":
    key = jax.random.PRNGKey(0)
    k_x, k_p, k_x2 = jax.random.split(key, 3)

    B, N, D = 2, 64, 32          # batch, tokens, embed_dim
    x = jax.random.normal(k_x, (B, N, D), dtype=jnp.float32)
    params = make_params(k_p, D)

    # f32 MXU path (tight tolerance)
    out = jax.block_until_ready(swin_layer_forward(x, params))
    ref = _reference(x, params)
    assert out.shape == ref.shape
    assert jnp.allclose(out, ref, atol=1e-4, rtol=1e-4), (
        float(jnp.max(jnp.abs(out - ref))))

    # bf16 MXU-operand path (v6e/v7x optimization) -- looser tolerance
    out_bf16 = jax.block_until_ready(
        swin_layer_forward(x, params, use_bf16_mxu=True))
    assert jnp.allclose(out_bf16, ref, atol=5e-2, rtol=5e-2), (
        float(jnp.max(jnp.abs(out_bf16 - ref))))

    # shape whose row count is not a tile multiple (exercises padding path)
    x2 = jax.random.normal(k_x2, (2, 100, D), dtype=jnp.float32)
    out2 = jax.block_until_ready(swin_layer_forward(x2, params))
    ref2 = _reference(x2, params)
    assert jnp.allclose(out2, ref2, atol=1e-4, rtol=1e-4), (
        float(jnp.max(jnp.abs(out2 - ref2))))

    print("KERNEL_OK")
</pallas_src>

<mosaic_0001>
module attributes {stable_mosaic.version = 11 : i64} {
  func.func @_swin_layer_kernel(%arg0: i32, %arg1: memref<128x32xf32, #tpu.memory_space<vmem>>, %arg2: memref<8x32xf32, #tpu.memory_space<vmem>>, %arg3: memref<32x32xf32, #tpu.memory_space<vmem>>, %arg4: memref<128x32xf32, #tpu.memory_space<vmem>>) attributes {dimension_semantics = [#tpu.dimension_semantics<parallel>], iteration_bounds = array<i64: 1>, scalar_prefetch = 0 : i64, scratch_operands = 0 : i64, tpu.core_type = #tpu.core_type<tc>, window_params = [{transform_indices = @transform_0, window_bounds = array<i64: 128, 32>}, {pipeline_mode = #tpu.pipeline_mode<synchronous>, transform_indices = @transform_1, window_bounds = array<i64: 8, 32>}, {pipeline_mode = #tpu.pipeline_mode<synchronous>, transform_indices = @transform_2, window_bounds = array<i64: 32, 32>}, {transform_indices = @transform_3, window_bounds = array<i64: 128, 32>}]} {
    %c0 = arith.constant 0 : index
    %c0_0 = arith.constant 0 : index
    %0 = vector.load %arg1[%c0, %c0_0] : memref<128x32xf32, #tpu.memory_space<vmem>>, vector<128x32xf32>
    %c0_1 = arith.constant 0 : index
    %c0_2 = arith.constant 0 : index
    %1 = vector.load %arg2[%c0_1, %c0_2] : memref<8x32xf32, #tpu.memory_space<vmem>>, vector<8x32xf32>
    %2 = vector.extract_strided_slice %1 {offsets = [0, 0], sizes = [1, 32], strides = [1, 1]} : vector<8x32xf32> to vector<1x32xf32>
    %3 = vector.extract_strided_slice %1 {offsets = [1, 0], sizes = [1, 32], strides = [1, 1]} : vector<8x32xf32> to vector<1x32xf32>
    %4 = vector.extract_strided_slice %1 {offsets = [2, 0], sizes = [1, 32], strides = [1, 1]} : vector<8x32xf32> to vector<1x32xf32>
    %5 = vector.extract_strided_slice %1 {offsets = [3, 0], sizes = [1, 32], strides = [1, 1]} : vector<8x32xf32> to vector<1x32xf32>
    %6 = vector.extract_strided_slice %1 {offsets = [4, 0], sizes = [1, 32], strides = [1, 1]} : vector<8x32xf32> to vector<1x32xf32>
    %cst = arith.constant dense<0.000000e+00> : vector<128xf32>
    %7 = vector.multi_reduction <add>, %0, %cst [1] : vector<128x32xf32> to vector<128xf32>
    %8 = vector.shape_cast %7 : vector<128xf32> to vector<128x1xf32>
    %cst_3 = arith.constant 3.200000e+01 : f32
    %9 = vector.broadcast %cst_3 : f32 to vector<128x1xf32>
    %10 = arith.divf %8, %9 : vector<128x1xf32>
    %11 = vector.broadcast %10 : vector<128x1xf32> to vector<128x32xf32>
    %12 = arith.subf %0, %11 : vector<128x32xf32>
    %13 = arith.mulf %12, %12 : vector<128x32xf32>
    %cst_4 = arith.constant dense<0.000000e+00> : vector<128xf32>
    %14 = vector.multi_reduction <add>, %13, %cst_4 [1] : vector<128x32xf32> to vector<128xf32>
    %15 = vector.shape_cast %14 : vector<128xf32> to vector<128x1xf32>
    %cst_5 = arith.constant 3.200000e+01 : f32
    %16 = vector.broadcast %cst_5 : f32 to vector<128x1xf32>
    %17 = arith.divf %15, %16 : vector<128x1xf32>
    %cst_6 = arith.constant 9.99999974E-6 : f32
    %18 = vector.broadcast %cst_6 : f32 to vector<128x1xf32>
    %19 = arith.addf %17, %18 : vector<128x1xf32>
    %20 = math.rsqrt %19 : vector<128x1xf32>
    %21 = vector.broadcast %20 : vector<128x1xf32> to vector<128x32xf32>
    %22 = arith.mulf %12, %21 : vector<128x32xf32>
    %23 = vector.broadcast %2 : vector<1x32xf32> to vector<128x32xf32>
    %24 = arith.mulf %22, %23 : vector<128x32xf32>
    %25 = vector.broadcast %3 : vector<1x32xf32> to vector<128x32xf32>
    %26 = arith.addf %24, %25 : vector<128x32xf32>
    %27 = arith.addf %26, %0 : vector<128x32xf32>
    %cst_7 = arith.constant dense<0.000000e+00> : vector<128xf32>
    %28 = vector.multi_reduction <add>, %27, %cst_7 [1] : vector<128x32xf32> to vector<128xf32>
    %29 = vector.shape_cast %28 : vector<128xf32> to vector<128x1xf32>
    %cst_8 = arith.constant 3.200000e+01 : f32
    %30 = vector.broadcast %cst_8 : f32 to vector<128x1xf32>
    %31 = arith.divf %29, %30 : vector<128x1xf32>
    %32 = vector.broadcast %31 : vector<128x1xf32> to vector<128x32xf32>
    %33 = arith.subf %27, %32 : vector<128x32xf32>
    %34 = arith.mulf %33, %33 : vector<128x32xf32>
    %cst_9 = arith.constant dense<0.000000e+00> : vector<128xf32>
    %35 = vector.multi_reduction <add>, %34, %cst_9 [1] : vector<128x32xf32> to vector<128xf32>
    %36 = vector.shape_cast %35 : vector<128xf32> to vector<128x1xf32>
    %cst_10 = arith.constant 3.200000e+01 : f32
    %37 = vector.broadcast %cst_10 : f32 to vector<128x1xf32>
    %38 = arith.divf %36, %37 : vector<128x1xf32>
    %cst_11 = arith.constant 9.99999974E-6 : f32
    %39 = vector.broadcast %cst_11 : f32 to vector<128x1xf32>
    %40 = arith.addf %38, %39 : vector<128x1xf32>
    %41 = math.rsqrt %40 : vector<128x1xf32>
    %42 = vector.broadcast %41 : vector<128x1xf32> to vector<128x32xf32>
    %43 = arith.mulf %33, %42 : vector<128x32xf32>
    %44 = vector.broadcast %4 : vector<1x32xf32> to vector<128x32xf32>
    %45 = arith.mulf %43, %44 : vector<128x32xf32>
    %46 = vector.broadcast %5 : vector<1x32xf32> to vector<128x32xf32>
    %47 = arith.addf %45, %46 : vector<128x32xf32>
    %c0_12 = arith.constant 0 : index
    %c0_13 = arith.constant 0 : index
    %48 = vector.load %arg3[%c0_12, %c0_13] : memref<32x32xf32, #tpu.memory_space<vmem>>, vector<32x32xf32>
    %cst_14 = arith.constant dense<0.000000e+00> : vector<128x32xf32>
    %49 = tpu.matmul %47, %48, %cst_14 {dimension_numbers = #tpu.dot_dimension_numbers<[1], [0], [0], [1], [0, 0, 1, 1], [], []>} : vector<128x32xf32>, vector<32x32xf32>, vector<128x32xf32> -> vector<128x32xf32>
    %50 = vector.broadcast %6 : vector<1x32xf32> to vector<128x32xf32>
    %51 = arith.addf %49, %50 : vector<128x32xf32>
    %52 = arith.addf %51, %27 : vector<128x32xf32>
    %c0_15 = arith.constant 0 : index
    %c0_16 = arith.constant 0 : index
    %53 = vector.load %arg4[%c0_15, %c0_16] : memref<128x32xf32, #tpu.memory_space<vmem>>, vector<128x32xf32>
    tpu.vector_store %arg4[%c0_15, %c0_16], %52 {strides = array<i32>} : memref<128x32xf32, #tpu.memory_space<vmem>>, vector<128x32xf32>,
    return
  }
  func.func @transform_0(%arg0: i32) -> (i32, i32) {
    %c0_i32 = arith.constant 0 : i32
    %c0_i32_0 = arith.constant 0 : i32
    return %arg0, %c0_i32 : i32, i32
  }
  func.func @transform_1(%arg0: i32) -> (i32, i32) {
    %c0_i32 = arith.constant 0 : i32
    %c0_i32_0 = arith.constant 0 : i32
    %c0_i32_1 = arith.constant 0 : i32
    return %c0_i32, %c0_i32_0 : i32, i32
  }
  func.func @transform_2(%arg0: i32) -> (i32, i32) {
    %c0_i32 = arith.constant 0 : i32
    %c0_i32_0 = arith.constant 0 : i32
    %c0_i32_1 = arith.constant 0 : i32
    return %c0_i32, %c0_i32_0 : i32, i32
  }
  func.func @transform_3(%arg0: i32) -> (i32, i32) {
    %c0_i32 = arith.constant 0 : i32
    %c0_i32_0 = arith.constant 0 : i32
    return %arg0, %c0_i32 : i32, i32
  }
}

</mosaic_0001>

<bundles_post_ra>
// kernel: swin_layer_forward.1
= control target key start
LH: loop header
LB: loop body
LE: loop exit
PB: predicated region body
PF: predicated region fallthrough
CT: control target
= control target key end

     0   :  { %vm31_vm0 = vcmask 261120   ;;  %v1077_v32 = vmov 32.0   ;;  %s2365_s0 = inlined_call_operand.vmem [shape: f32[128,32], index: 0, kind: input, shape index: {}]   ;;  %s2366_s1 = inlined_call_operand.vmem [shape: f32[8,32], index: 1, kind: input, shape index: {}]   ;;  %s2367_s2 = inlined_call_operand.vmem [shape: f32[32,32], index: 2, kind: input, shape index: {}]   ;;  %s2368_s3 = inlined_call_operand.vmem [shape: f32[128,32], index: 3, kind: output, shape index: {}]  }
   0x1   :  { %v1101_v0 = vld [vmem:[%s2365_s0 + $0x48] sm:$0xff]  ;;  %v1106_v1 = vld [vmem:[%s2365_s0 + $0x40] sm:$0xff]  ;;  %v1143_v12 = vld [vmem:[%s2365_s0 + $0x50] sm:$0xff]  ;;  %1010 = vrcp.f32 %v1077_v32 }
   0x2   :  { %v1111_v2 = vld [vmem:[%s2365_s0] sm:$0xff]  ;;  %v59_v3 = vsel %vm31_vm0, %v1101_v0, 0.0  ;;  %v56_v4 = vsel %vm31_vm0, %v1106_v1, 0.0  ;;  %v1122_v6 = vld [vmem:[%s2365_s0 + $0x68] sm:$0xff]  ;;  %v62_v15 = vsel %vm31_vm0, %v1143_v12, 0.0  ;;  %v1164_v18 = vld [vmem:[%s2365_s0 + $0x30] sm:$0xff] }
   0x3   :  { %v32_v5 = vsel %vm31_vm0, %v1111_v2, 0.0  ;;  %60 = vadd.xlane.f32.xlu2 %v59_v3  ;;  %57 = vadd.xlane.f32.xlu0 %v56_v4  ;;  %v1127_v7 = vld [vmem:[%s2365_s0 + $0x60] sm:$0xff]  ;;  %v71_v9 = vsel %vm31_vm0, %v1122_v6, 0.0  ;;  %v1148_v13 = vld [vmem:[%s2365_s0 + $0x8] sm:$0xff]  ;;  %v1169_v19 = vld [vmem:[%s2365_s0 + $0x70] sm:$0xff]  ;;  %v50_v21 = vsel %vm31_vm0, %v1164_v18, 0.0 }
   0x4   :  { %33 = vadd.xlane.f32.xlu1 %v32_v5  ;;  %v1132_v8 = vld [vmem:[%s2365_s0 + $0x20] sm:$0xff]  ;;  %v68_v10 = vsel %vm31_vm0, %v1127_v7, 0.0  ;;  %v1153_v14 = vld [vmem:[%s2365_s0 + $0x28] sm:$0xff]  ;;  %v35_v16 = vsel %vm31_vm0, %v1148_v13, 0.0  ;;  %v1174_v20 = vld [vmem:[%s2365_s0 + $0x10] sm:$0xff]  ;;  %v74_v22 = vsel %vm31_vm0, %v1169_v19, 0.0 }
   0x5   :  { %v44_v11 = vsel %vm31_vm0, %v1132_v8, 0.0  ;;  %v47_v17 = vsel %vm31_vm0, %v1153_v14, 0.0  ;;  %v38_v23 = vsel %vm31_vm0, %v1174_v20, 0.0  ;;  %v1185_v24 = vld [vmem:[%s2365_s0 + $0x18] sm:$0xff] }
   0x6   :  { %v1190_v25 = vld [vmem:[%s2365_s0 + $0x58] sm:$0xff]  ;;  %v41_v27 = vsel %vm31_vm0, %v1185_v24, 0.0 }
   0x7   :  { %v1195_v26 = vld [vmem:[%s2365_s0 + $0x78] sm:$0xff]  ;;  %v65_v28 = vsel %vm31_vm0, %v1190_v25, 0.0  ;;  %v1011_v33 = vpop.eup %1010 }
   0x8   :  { %v77_v29 = vsel %vm31_vm0, %v1195_v26, 0.0  ;;  %v1206_v30 = vld [vmem:[%s2365_s0 + $0x38] sm:$0xff]  ;;  %v81_v34 = vmul.f32 32.0, %v1011_v33  ;;  %vm85_vm1 = vweird.f32 %v1011_v33 }
   0x9   :  { %v53_v31 = vsel %vm31_vm0, %v1206_v30, 0.0 }
   0xa   :  { %v82_v35 = vsub.f32 1.0, %v81_v34 }
   0xb   :  { %72 = vadd.xlane.f32.xlu2 %v71_v9  ;;  %69 = vadd.xlane.f32.xlu0 %v68_v10 }
   0xc   :  { %45 = vadd.xlane.f32.xlu1 %v44_v11  ;;  %v83_v36 = vmul.f32 %v1011_v33, %v82_v35 }
   0xe   :  { %v84_v37 = vadd.f32 %v1011_v33, %v83_v36 }
  0x10   :  { %v1210_v38 = vsel %vm85_vm1, %v1011_v33, %v84_v37 }
  0x13   :  { %63 = vadd.xlane.f32.xlu2 %v62_v15  ;;  %36 = vadd.xlane.f32.xlu0 %v35_v16 }
  0x14   :  { %48 = vadd.xlane.f32.xlu1 %v47_v17 }
  0x1b   :  { %51 = vadd.xlane.f32.xlu2 %v50_v21  ;;  %75 = vadd.xlane.f32.xlu0 %v74_v22 }
  0x1c   :  { %39 = vadd.xlane.f32.xlu1 %v38_v23 }
  0x23   :  { %42 = vadd.xlane.f32.xlu2 %v41_v27  ;;  %66 = vadd.xlane.f32.xlu0 %v65_v28 }
  0x24   :  { %78 = vadd.xlane.f32.xlu1 %v77_v29 }
  0x2b   :  { %54 = vadd.xlane.f32.xlu0 %v53_v31 }
  0x76   :  { %v61_v39 = vpop.xlane.xlu2 %60  ;;  %v58_v40 = vpop.xlane.xlu0 %57 }
  0x77   :  { %v95_v41 = vmul.f32 %v1210_v38, %v58_v40  ;;  %v34_v42 = vpop.xlane.xlu1 %33  ;;  %v96_v56 = vmul.f32 %v1210_v38, %v61_v39 }
  0x78   :  { %v87_v43 = vmul.f32 %v1210_v38, %v34_v42 }
  0x79   :  { %v1215_v44 = vsub.f32 %v1106_v1, %v95_v41  ;;  %v1246_v63 = vsub.f32 %v1101_v0, %v96_v56 }
  0x7a   :  { %v1218_v45 = vsub.f32 %v1111_v2, %v87_v43 }
  0x7b   :  { %v127_v46 = vmul.f32 %v1215_v44, %v1215_v44  ;;  %v128_v23 = vmul.f32 %v1246_v63, %v1246_v63 }
  0x7c   :  { %v119_v47 = vmul.f32 %v1218_v45, %v1218_v45 }
  0x7d   :  { %v159_v48 = vsel %vm31_vm0, %v127_v46, 0.0  ;;  %v162_v31 = vsel %vm31_vm0, %v128_v23, 0.0 }
  0x7e   :  { %v73_v49 = vpop.xlane.xlu2 %72  ;;  %v70_v50 = vpop.xlane.xlu0 %69  ;;  %160 = vadd.xlane.f32.xlu1 %v159_v48  ;;  %v135_v51 = vsel %vm31_vm0, %v119_v47, 0.0 }
  0x7f   :  { %v100_v52 = vmul.f32 %v1210_v38, %v73_v49  ;;  %v99_v53 = vmul.f32 %v1210_v38, %v70_v50  ;;  %136 = vadd.xlane.f32.xlu0 %v135_v51  ;;  %v46_v54 = vpop.xlane.xlu1 %45 }
  0x80   :  { %v91_v55 = vmul.f32 %v1210_v38, %v46_v54 }
  0x81   :  { %v1231_v57 = vsub.f32 %v1122_v6, %v100_v52  ;;  %v1234_v58 = vsub.f32 %v1127_v7, %v99_v53 }
  0x82   :  { %v1237_v59 = vsub.f32 %v1132_v8, %v91_v55 }
  0x83   :  { %v131_v60 = vmul.f32 %v1234_v58, %v1234_v58  ;;  %v132_v61 = vmul.f32 %v1231_v57, %v1231_v57 }
  0x84   :  { %v123_v62 = vmul.f32 %v1237_v59, %v1237_v59 }
  0x85   :  { %v171_v3 = vsel %vm31_vm0, %v131_v60, 0.0  ;;  %v174_v4 = vsel %vm31_vm0, %v132_v61, 0.0 }
  0x86   :  { %v64_v5 = vpop.xlane.xlu2 %63  ;;  %172 = vadd.xlane.f32.xlu2 %v171_v3  ;;  %v37_v9 = vpop.xlane.xlu0 %36  ;;  %v147_v10 = vsel %vm31_vm0, %v123_v62, 0.0 }
  0x87   :  { %v97_v11 = vmul.f32 %v1210_v38, %v64_v5  ;;  %v88_v15 = vmul.f32 %v1210_v38, %v37_v9  ;;  %175 = vadd.xlane.f32.xlu0 %v174_v4  ;;  %148 = vadd.xlane.f32.xlu1 %v147_v10  ;;  %v49_v16 = vpop.xlane.xlu1 %48 }
  0x88   :  { %v92_v17 = vmul.f32 %v1210_v38, %v49_v16 }
  0x89   :  { %v1255_v21 = vsub.f32 %v1143_v12, %v97_v11  ;;  %v1258_v22 = vsub.f32 %v1148_v13, %v88_v15 }
  0x8a   :  { %v1267_v29 = vsub.f32 %v1153_v14, %v92_v17 }
  0x8b   :  { %v129_v27 = vmul.f32 %v1255_v21, %v1255_v21  ;;  %v120_v28 = vmul.f32 %v1258_v22, %v1258_v22 }
  0x8c   :  { %v124_v39 = vmul.f32 %v1267_v29, %v1267_v29 }
  0x8d   :  { %v165_v32 = vsel %vm31_vm0, %v129_v27, 0.0  ;;  %v138_v33 = vsel %vm31_vm0, %v120_v28, 0.0 }
  0x8e   :  { %v52_v34 = vpop.xlane.xlu2 %51  ;;  %163 = vadd.xlane.f32.xlu2 %v162_v31  ;;  %v76_v35 = vpop.xlane.xlu0 %75  ;;  %v150_v48 = vsel %vm31_vm0, %v124_v39, 0.0 }
  0x8f   :  { %v93_v36 = vmul.f32 %v1210_v38, %v52_v34  ;;  %v101_v37 = vmul.f32 %v1210_v38, %v76_v35  ;;  %166 = vadd.xlane.f32.xlu0 %v165_v32  ;;  %139 = vadd.xlane.f32.xlu1 %v138_v33  ;;  %v40_v40 = vpop.xlane.xlu1 %39 }
  0x90   :  { %v89_v41 = vmul.f32 %v1210_v38, %v40_v40 }
  0x91   :  { %v1278_v42 = vsub.f32 %v1164_v18, %v93_v36  ;;  %v1281_v43 = vsub.f32 %v1169_v19, %v101_v37 }
  0x92   :  { %v1289_v49 = vsub.f32 %v1174_v20, %v89_v41 }
  0x93   :  { %v125_v46 = vmul.f32 %v1278_v42, %v1278_v42  ;;  %v133_v47 = vmul.f32 %v1281_v43, %v1281_v43 }
  0x94   :  { %v121_v56 = vmul.f32 %v1289_v49, %v1289_v49 }
  0x95   :  { %v153_v50 = vsel %vm31_vm0, %v125_v46, 0.0  ;;  %v177_v51 = vsel %vm31_vm0, %v133_v47, 0.0 }
  0x96   :  { %v43_v52 = vpop.xlane.xlu2 %42  ;;  %v67_v53 = vpop.xlane.xlu0 %66  ;;  %151 = vadd.xlane.f32.xlu2 %v150_v48  ;;  %v141_v9 = vsel %vm31_vm0, %v121_v56, 0.0 }
  0x97   :  { %v90_v54 = vmul.f32 %v1210_v38, %v43_v52  ;;  %v98_v55 = vmul.f32 %v1210_v38, %v67_v53  ;;  %154 = vadd.xlane.f32.xlu0 %v153_v50  ;;  %178 = vadd.xlane.f32.xlu1 %v177_v51  ;;  %v79_v60 = vpop.xlane.xlu1 %78 }
  0x98   :  { %v102_v61 = vmul.f32 %v1210_v38, %v79_v60 }
  0x99   :  { %v1299_v62 = vsub.f32 %v1185_v24, %v90_v54  ;;  %v1302_v3 = vsub.f32 %v1190_v25, %v98_v55 }
  0x9a   :  { %v1310_v10 = vsub.f32 %v1195_v26, %v102_v61 }
  0x9b   :  { %v122_v4 = vmul.f32 %v1299_v62, %v1299_v62  ;;  %v130_v5 = vmul.f32 %v1302_v3, %v1302_v3 }
  0x9c   :  { %v134_v23 = vmul.f32 %v1310_v10, %v1310_v10 }
  0x9d   :  { %v144_v11 = vsel %vm31_vm0, %v122_v4, 0.0  ;;  %v168_v15 = vsel %vm31_vm0, %v130_v5, 0.0  ;;  %v1357_v5 = vld [vmem:[%s2366_s1] sm:$0xff] }
  0x9e   :  { %v55_v16 = vpop.xlane.xlu0 %54  ;;  %142 = vadd.xlane.f32.xlu2 %v141_v9  ;;  %v180_v31 = vsel %vm31_vm0, %v134_v23, 0.0  ;;  %2376 = vst [vmem:[#allocation2_spill] sm:$0xff] %v1357_v5 }
  0x9f   :  { %v94_v17 = vmul.f32 %v1210_v38, %v55_v16  ;;  %145 = vadd.xlane.f32.xlu0 %v144_v11  ;;  %169 = vadd.xlane.f32.xlu1 %v168_v15 }
  0xa1   :  { %v1318_v27 = vsub.f32 %v1206_v30, %v94_v17 }
  0xa3   :  { %v126_v28 = vmul.f32 %v1318_v27, %v1318_v27 }
  0xa5   :  { %v156_v32 = vsel %vm31_vm0, %v126_v28, 0.0 }
  0xa6   :  { %181 = vadd.xlane.f32.xlu2 %v180_v31  ;;  %v1362_v31 = vperm.slane %v1357_v5, 0 }
  0xa7   :  { %157 = vadd.xlane.f32.xlu1 %v156_v32  ;;  %v1365_v32 = vperm.slane %v1357_v5, 1 }
  0xf1   :  { %v161_v33 = vpop.xlane.xlu1 %160 }
  0xf2   :  { %v137_v34 = vpop.xlane.xlu0 %136  ;;  %v191_v35 = vmul.f32 %v161_v33, %v1210_v38 }
  0xf3   :  { %v183_v36 = vmul.f32 %v137_v34, %v1210_v38 }
  0xf4   :  { %v1326_v37 = vadd.f32 1e-05, %v191_v35 }
  0xf5   :  { %v1328_v39 = vadd.f32 1e-05, %v183_v36 }
  0xf6   :  { %1012 = vrsqrt.f32 %v1326_v37  ;;  %vm301_vm3 = vweird.f32 %v1326_v37 }
  0xf7   :  { %1014 = vrsqrt.f32 %v1328_v39  ;;  %vm221_vm2 = vweird.f32 %v1328_v39 }
  0xf9   :  { %v173_v40 = vpop.xlane.xlu2 %172 }
  0xfa   :  { %v195_v41 = vmul.f32 %v173_v40, %v1210_v38  ;;  %v176_v46 = vpop.xlane.xlu0 %175  ;;  %v149_v47 = vpop.xlane.xlu1 %148 }
  0xfb   :  { %v196_v48 = vmul.f32 %v176_v46, %v1210_v38  ;;  %v187_v50 = vmul.f32 %v149_v47, %v1210_v38 }
  0xfc   :  { %v1335_v51 = vpop.eup %1012  ;;  %v1337_v52 = vadd.f32 1e-05, %v195_v41 }
  0xfd   :  { %v1339_v53 = vpop.eup %1014  ;;  %v296_v54 = vmul.f32 %v1335_v51, %v1326_v37  ;;  %v1343_v55 = vadd.f32 1e-05, %v196_v48  ;;  %v1345_v56 = vadd.f32 1e-05, %v187_v50  ;;  %vm302_vm4 = vweird.f32 %v1335_v51 }
  0xfe   :  { %v216_v60 = vmul.f32 %v1339_v53, %v1328_v39  ;;  %1016 = vrsqrt.f32 %v1337_v52  ;;  %vm222_vm5 = vweird.f32 %v1339_v53  ;;  %vm341_vm6 = vweird.f32 %v1337_v52  ;;  %vm1407_vm11 = vmor %vm301_vm3, %vm302_vm4 }
  0xff   :  { %v297_v61 = vmul.f32 %v1335_v51, %v296_v54  ;;  %1018 = vrsqrt.f32 %v1343_v55  ;;  %vm351_vm7 = vweird.f32 %v1343_v55  ;;  %vm261_vm9 = vweird.f32 %v1345_v56  ;;  %vm1419_vm12 = vmor %vm221_vm2, %vm222_vm5 }
 0x100   :  { %v217_v4 = vmul.f32 %v1339_v53, %v216_v60  ;;  %1020 = vrsqrt.f32 %v1345_v56 }
 0x101   :  { %v298_v9 = vmul.f32 0.5, %v297_v61  ;;  %v164_v11 = vpop.xlane.xlu2 %163 }
 0x102   :  { %v218_v15 = vmul.f32 0.5, %v217_v4  ;;  %v192_v16 = vmul.f32 %v164_v11, %v1210_v38  ;;  %v167_v17 = vpop.xlane.xlu0 %166  ;;  %v140_v23 = vpop.xlane.xlu1 %139 }
 0x103   :  { %v193_v28 = vmul.f32 %v167_v17, %v1210_v38  ;;  %v299_v34 = vsub.f32 1.5, %v298_v9  ;;  %v184_v50 = vmul.f32 %v140_v23, %v1210_v38 }
 0x104   :  { %v1367_v33 = vpop.eup %1016  ;;  %v1371_v35 = vadd.f32 1e-05, %v192_v16  ;;  %v219_v40 = vsub.f32 1.5, %v218_v15 }
 0x105   :  { %v1373_v36 = vpop.eup %1018  ;;  %v336_v41 = vmul.f32 %v1367_v33, %v1337_v52  ;;  %v1378_v46 = vadd.f32 1e-05, %v193_v28  ;;  %v300_v61 = vmul.f32 %v1335_v51, %v299_v34  ;;  %vm342_vm8 = vweird.f32 %v1367_v33 }
 0x106   :  { %v1380_v47 = vpop.eup %1020  ;;  %v346_v48 = vmul.f32 %v1373_v36, %v1343_v55  ;;  %1022 = vrsqrt.f32 %v1371_v35  ;;  %v220_v9 = vmul.f32 %v1339_v53, %v219_v40  ;;  %vm352_vm10 = vweird.f32 %v1373_v36  ;;  %vm1439_vm13 = vmor %vm341_vm6, %vm342_vm8 }
 0x107   :  { %v337_v54 = vmul.f32 %v1367_v33, %v336_v41  ;;  %v256_v60 = vmul.f32 %v1380_v47, %v1345_v56  ;;  %1024 = vrsqrt.f32 %v1378_v46  ;;  %v1400_v23 = vadd.f32 1e-05, %v184_v50  ;;  %vm1457_vm15 = vmor %vm351_vm7, %vm352_vm10 }
 0x108   :  { %v347_v4 = vmul.f32 %v1373_v36, %v346_v48  ;;  %v304_v37 = vsel %vm1407_vm11, %v1335_v51, %v300_v61  ;;  %vm262_vm14 = vweird.f32 %v1380_v47  ;;  %vm311_vm1 = vweird.f32 %v1371_v35 }
 0x109   :  { %v338_v11 = vmul.f32 0.5, %v337_v54  ;;  %v257_v15 = vmul.f32 %v1380_v47, %v256_v60  ;;  %v152_v16 = vpop.xlane.xlu2 %151  ;;  %1026 = vrsqrt.f32 %v1400_v23  ;;  %vm321_vm3 = vweird.f32 %v1378_v46  ;;  %vm1485_vm4 = vmor %vm261_vm9, %vm262_vm14 }
 0x10a   :  { %v348_v17 = vmul.f32 0.5, %v347_v4  ;;  %v155_v28 = vpop.xlane.xlu0 %154  ;;  %v188_v34 = vmul.f32 %v152_v16, %v1210_v38  ;;  %v179_v41 = vpop.xlane.xlu1 %178  ;;  %vm231_vm5 = vweird.f32 %v1400_v23 }
 0x10b   :  { %v339_v48 = vsub.f32 1.5, %v338_v11  ;;  %v258_v54 = vmul.f32 0.5, %v257_v15  ;;  %v189_v60 = vmul.f32 %v155_v28, %v1210_v38  ;;  %v197_v4 = vmul.f32 %v179_v41, %v1210_v38 }
 0x10c   :  { %v1413_v50 = vpop.eup %1022  ;;  %v349_v11 = vsub.f32 1.5, %v348_v17  ;;  %v1427_v15 = vadd.f32 1e-05, %v188_v34  ;;  %v224_v28 = vsel %vm1419_vm12, %v1339_v53, %v220_v9 }
 0x10d   :  { %v340_v41 = vmul.f32 %v1367_v33, %v339_v48  ;;  %v259_v39 = vsub.f32 1.5, %v258_v54  ;;  %v306_v5 = vmul.f32 %v1413_v50, %v1371_v35  ;;  %v1445_v17 = vadd.f32 1e-05, %v189_v60  ;;  %v1448_v53 = vpop.eup %1024 }
 0x10e   :  { %v350_v61 = vmul.f32 %v1373_v36, %v349_v11  ;;  %1028 = vrsqrt.f32 %v1427_v15  ;;  %v1463_v48 = vadd.f32 1e-05, %v197_v4  ;;  %v375_v54 = vmul.f32 %v224_v28, %v1218_v45 }
 0x10f   :  { %v344_v9 = vsel %vm1439_vm13, %v1367_v33, %v340_v41  ;;  %v260_v34 = vmul.f32 %v1380_v47, %v259_v39  ;;  %v307_v40 = vmul.f32 %v1413_v50, %v306_v5  ;;  %v383_v60 = vmul.f32 %v304_v37, %v1215_v44  ;;  %v1473_v5 = vpop.eup %1026 }
 0x110   :  { %v316_v33 = vmul.f32 %v1448_v53, %v1378_v46  ;;  %vm312_vm2 = vweird.f32 %v1413_v50  ;;  %1030 = vrsqrt.f32 %v1445_v17  ;;  %v1476_v4 = vmul.f32 %v344_v9, %v1234_v58 }
 0x111   :  { %v308_v55 = vmul.f32 0.5, %v307_v40  ;;  %v143_v16 = vpop.xlane.xlu2 %142  ;;  %v354_v44 = vsel %vm1457_vm15, %v1373_v36, %v350_v61  ;;  %1032 = vrsqrt.f32 %v1463_v48  ;;  %v264_v11 = vsel %vm1485_vm4, %v1380_v47, %v260_v34  ;;  %vm1516_vm8 = vmor %vm311_vm1, %vm312_vm2 }
 0x112   :  { %v317_v37 = vmul.f32 %v1448_v53, %v316_v33  ;;  %v146_v58 = vpop.xlane.xlu0 %145  ;;  %vm322_vm6 = vweird.f32 %v1448_v53  ;;  %v226_v56 = vmul.f32 %v1473_v5, %v1400_v23  ;;  %v392_v51 = vmul.f32 %v1362_v31, %v375_v54 }
 0x113   :  { %v309_v36 = vsub.f32 1.5, %v308_v55  ;;  %v186_v39 = vmul.f32 %v146_v58, %v1210_v38  ;;  %v185_v61 = vmul.f32 %v143_v16, %v1210_v38  ;;  %v388_v9 = vmul.f32 %v354_v44, %v1231_v57  ;;  %vm1549_vm12 = vmor %vm321_vm3, %vm322_vm6 }
 0x114   :  { %v1498_v28 = vpop.eup %1028  ;;  %v318_v41 = vmul.f32 0.5, %v317_v37  ;;  %v227_v47 = vmul.f32 %v1473_v5, %v226_v56  ;;  %vm271_vm7 = vweird.f32 %v1427_v15  ;;  %v1510_v40 = vmul.f32 %v264_v11, %v1237_v59 }
 0x115   :  { %v310_v52 = vmul.f32 %v1413_v50, %v309_v36  ;;  %v266_v34 = vmul.f32 %v1498_v28, %v1427_v15  ;;  %vm281_vm9 = vweird.f32 %v1445_v17  ;;  %v1521_v33 = vadd.f32 1e-05, %v186_v39  ;;  %v170_v39 = vpop.xlane.xlu1 %169 }
 0x116   :  { %v319_v57 = vsub.f32 1.5, %v318_v41  ;;  %v1523_v55 = vpop.eup %1030  ;;  %v228_v16 = vmul.f32 0.5, %v227_v47  ;;  %vm232_vm10 = vweird.f32 %v1473_v5  ;;  %vm361_vm11 = vweird.f32 %v1463_v48 }
 0x117   :  { %v314_v59 = vsel %vm1516_vm8, %v1413_v50, %v310_v52  ;;  %v267_v35 = vmul.f32 %v1498_v28, %v266_v34  ;;  %v1530_v44 = vpop.eup %1032  ;;  %v276_v45 = vmul.f32 %v1523_v55, %v1445_v17  ;;  %v409_v37 = vadd.f32 %v1365_v32, %v392_v51  ;;  %vm1571_vm1 = vmor %vm231_vm5, %vm232_vm10 }
 0x118   :  { %v1536_v58 = vadd.f32 1e-05, %v185_v61  ;;  %v400_v11 = vmul.f32 %v1362_v31, %v383_v60  ;;  %v320_v50 = vmul.f32 %v1448_v53, %v319_v57  ;;  %v229_v36 = vsub.f32 1.5, %v228_v16 }
 0x119   :  { %v268_v56 = vmul.f32 0.5, %v267_v35  ;;  %v356_v41 = vmul.f32 %v1530_v44, %v1463_v48  ;;  %v1543_v52 = vmul.f32 %v314_v59, %v1246_v63  ;;  %v277_v60 = vmul.f32 %v1523_v55, %v276_v45 }
 0x11a   :  { %vm272_vm13 = vweird.f32 %v1498_v28  ;;  %1034 = vrsqrt.f32 %v1521_v33  ;;  %v230_v61 = vmul.f32 %v1473_v5, %v229_v36  ;;  %vm282_vm14 = vweird.f32 %v1523_v55 }
 0x11b   :  { %v269_v63 = vsub.f32 1.5, %v268_v56  ;;  %v357_v47 = vmul.f32 %v1530_v44, %v356_v41  ;;  %v278_v34 = vmul.f32 0.5, %v277_v60  ;;  %vm362_vm15 = vweird.f32 %v1530_v44  ;;  %vm1581_vm2 = vmor %vm271_vm7, %vm272_vm13 }
 0x11c   :  { %v1561_v46 = vadd.f32 %v409_v37, %v1111_v2  ;;  %1036 = vrsqrt.f32 %v1536_v58  ;;  %v324_v54 = vsel %vm1549_vm12, %v1448_v53, %v320_v50  ;;  %v417_v2 = vadd.f32 %v1365_v32, %v400_v11  ;;  %vm1596_vm4 = vmor %vm281_vm9, %vm282_vm14 }
 0x11d   :  { %v270_v59 = vmul.f32 %v1498_v28, %v269_v63  ;;  %v358_v16 = vmul.f32 0.5, %v357_v47  ;;  %v279_v35 = vsub.f32 1.5, %v278_v34  ;;  %vm251_vm3 = vweird.f32 %v1521_v33  ;;  %vm1628_vm5 = vmor %vm361_vm11, %vm362_vm15 }
 0x11e   :  { %v441_v23 = vsel %vm31_vm0, %v1561_v46, 0.0  ;;  %v194_v45 = vmul.f32 %v170_v39, %v1210_v38  ;;  %v234_v37 = vsel %vm1571_vm1, %v1473_v5, %v230_v61  ;;  %v1601_v50 = vadd.f32 %v417_v2, %v1106_v1 }
 0x11f   :  { %v359_v11 = vsub.f32 1.5, %v358_v16  ;;  %442 = vadd.xlane.f32.xlu1 %v441_v23  ;;  %v404_v36 = vmul.f32 %v1362_v31, %v1476_v4  ;;  %v280_v41 = vmul.f32 %v1523_v55, %v279_v35  ;;  %v274_v5 = vsel %vm1581_vm2, %v1498_v28, %v270_v59 }
 0x120   :  { %v1035_v56 = vpop.eup %1034  ;;  %v1609_v17 = vadd.f32 1e-05, %v194_v45  ;;  %v405_v39 = vmul.f32 %v1362_v31, %v388_v9  ;;  %v385_v51 = vmul.f32 %v324_v54, %v1255_v21  ;;  %v465_v4 = vsel %vm31_vm0, %v1601_v50, 0.0  ;;  %v182_v21 = vpop.xlane.xlu2 %181 }
 0x121   :  { %v360_v60 = vmul.f32 %v1530_v44, %v359_v11  ;;  %v246_v1 = vmul.f32 %v1035_v56, %v1521_v33  ;;  %v376_v63 = vmul.f32 %v234_v37, %v1258_v22  ;;  %v284_v28 = vsel %vm1596_vm4, %v1523_v55, %v280_v41  ;;  %466 = vadd.xlane.f32.xlu2 %v465_v4  ;;  %v158_v54 = vpop.xlane.xlu1 %157 }
 0x122   :  { %v1037_v61 = vpop.eup %1036  ;;  %1038 = vrsqrt.f32 %v1609_v17  ;;  %v421_v9 = vadd.f32 %v1365_v32, %v404_v36  ;;  %v380_v47 = vmul.f32 %v274_v5, %v1267_v29  ;;  %vm252_vm6 = vweird.f32 %v1035_v56 }
 0x123   :  { %v247_v22 = vmul.f32 %v1035_v56, %v246_v1  ;;  %v236_v55 = vmul.f32 %v1037_v61, %v1536_v58  ;;  %vm241_vm7 = vweird.f32 %v1536_v58  ;;  %v381_v57 = vmul.f32 %v284_v28, %v1278_v42  ;;  %vm1660_vm9 = vmor %vm251_vm3, %vm252_vm6 }
 0x124   :  { %v364_v29 = vsel %vm1628_vm5, %v1530_v44, %v360_v60  ;;  %v1639_v59 = vadd.f32 %v421_v9, %v1127_v7  ;;  %v422_v48 = vadd.f32 %v1365_v32, %v405_v39  ;;  %v198_v35 = vmul.f32 %v182_v21, %v1210_v38 }
 0x125   :  { %v248_v16 = vmul.f32 0.5, %v247_v22  ;;  %v237_v2 = vmul.f32 %v1037_v61, %v236_v55  ;;  %v396_v53 = vmul.f32 %v1362_v31, %v1510_v40  ;;  %v190_v44 = vmul.f32 %v158_v54, %v1210_v38 }
 0x126   :  { %v477_v23 = vsel %vm31_vm0, %v1639_v59, 0.0  ;;  %v1648_v42 = vadd.f32 %v422_v48, %v1122_v6  ;;  %v401_v7 = vmul.f32 %v1362_v31, %v1543_v52  ;;  %vm331_vm8 = vweird.f32 %v1609_v17 }
 0x127   :  { %v249_v45 = vsub.f32 1.5, %v248_v16  ;;  %v238_v37 = vmul.f32 0.5, %v237_v2  ;;  %478 = vadd.xlane.f32.xlu0 %v477_v23  ;;  %v1654_v15 = vadd.f32 1e-05, %v198_v35  ;;  %v413_v40 = vadd.f32 %v1365_v32, %v396_v53 }
 0x128   :  { %v1039_v11 = vpop.eup %1038  ;;  %v480_v52 = vsel %vm31_vm0, %v1648_v42, 0.0  ;;  %v1666_v36 = vadd.f32 1e-05, %v190_v44  ;;  %v418_v41 = vadd.f32 %v1365_v32, %v401_v7  ;;  %v402_v5 = vmul.f32 %v1362_v31, %v385_v51 }
 0x129   :  { %v250_v39 = vmul.f32 %v1035_v56, %v249_v45  ;;  %v239_v60 = vsub.f32 1.5, %v238_v37  ;;  %vm242_vm10 = vweird.f32 %v1037_v61  ;;  %v326_v1 = vmul.f32 %v1039_v11, %v1609_v17  ;;  %481 = vadd.xlane.f32.xlu1 %v480_v52 }
 0x12a   :  { %v389_v33 = vmul.f32 %v364_v29, %v1281_v43  ;;  %vm332_vm11 = vweird.f32 %v1039_v11  ;;  %1040 = vrsqrt.f32 %v1654_v15  ;;  %v1674_v4 = vadd.f32 %v413_v40, %v1132_v8  ;;  %vm243_vm12 = vmor %vm241_vm7, %vm242_vm10 }
 0x12b   :  { %v254_v28 = vsel %vm1660_vm9, %v1035_v56, %v250_v39  ;;  %v240_v9 = vmul.f32 %v1037_v61, %v239_v60  ;;  %v327_v21 = vmul.f32 %v1039_v11, %v326_v1  ;;  %1042 = vrsqrt.f32 %v1666_v36  ;;  %vm333_vm13 = vmor %vm331_vm8, %vm332_vm11 }
 0x12c   :  { %v378_v51 = vmul.f32 %v254_v28, %v1299_v62  ;;  %v453_v43 = vsel %vm31_vm0, %v1674_v4, 0.0  ;;  %v1685_v34 = vadd.f32 %v418_v41, %v1101_v0  ;;  %v419_v8 = vadd.f32 %v1365_v32, %v402_v5 }
 0x12d   :  { %v244_v22 = vsel %vm243_vm12, %v1037_v61, %v240_v9  ;;  %v328_v55 = vmul.f32 0.5, %v327_v21  ;;  %454 = vadd.xlane.f32.xlu2 %v453_v43  ;;  %v393_v56 = vmul.f32 %v1362_v31, %v376_v63  ;;  %v398_v54 = vmul.f32 %v1362_v31, %v381_v57 }
 0x12e   :  { %v377_v62 = vmul.f32 %v244_v22, %v1289_v49  ;;  %v468_v58 = vsel %vm31_vm0, %v1685_v34, 0.0  ;;  %v1694_v29 = vadd.f32 %v419_v8, %v1143_v12  ;;  %v397_v0 = vmul.f32 %v1362_v31, %v380_v47 }
 0x12f   :  { %v329_v48 = vsub.f32 1.5, %v328_v55  ;;  %469 = vadd.xlane.f32.xlu0 %v468_v58  ;;  %v410_v61 = vadd.f32 %v1365_v32, %v393_v56  ;;  %v415_v16 = vadd.f32 %v1365_v32, %v398_v54  ;;  %v406_v63 = vmul.f32 %v1362_v31, %v389_v33 }
 0x130   :  { %v1041_v2 = vpop.eup %1040  ;;  %v471_v49 = vsel %vm31_vm0, %v1694_v29, 0.0  ;;  %v414_v57 = vadd.f32 %v1365_v32, %v397_v0  ;;  %v394_v23 = vmul.f32 %v1362_v31, %v377_v62  ;;  %v395_v37 = vmul.f32 %v1362_v31, %v378_v51 }
 0x131   :  { %v1043_v35 = vpop.eup %1042  ;;  %v330_v53 = vmul.f32 %v1039_v11, %v329_v48  ;;  %v366_v12 = vmul.f32 %v1041_v2, %v1654_v15  ;;  %472 = vadd.xlane.f32.xlu1 %v471_v49  ;;  %v1705_v47 = vadd.f32 %v410_v61, %v1148_v13  ;;  %v1713_v7 = vadd.f32 %v415_v16, %v1164_v18 }
 0x132   :  { %v286_v44 = vmul.f32 %v1043_v35, %v1666_v36  ;;  %v1716_v45 = vadd.f32 %v414_v57, %v1153_v14  ;;  %v423_v52 = vadd.f32 %v1365_v32, %v406_v63  ;;  %v411_v39 = vadd.f32 %v1365_v32, %v394_v23 }
 0x133   :  { %v334_v40 = vsel %vm333_vm13, %v1039_v11, %v330_v53  ;;  %v367_v6 = vmul.f32 %v1041_v2, %v366_v12  ;;  %v444_v13 = vsel %vm31_vm0, %v1705_v47, 0.0  ;;  %v459_v14 = vsel %vm31_vm0, %v1713_v7, 0.0 }
 0x134   :  { %v386_v17 = vmul.f32 %v334_v40, %v1302_v3  ;;  %v287_v41 = vmul.f32 %v1043_v35, %v286_v44  ;;  %v456_v5 = vsel %vm31_vm0, %v1716_v45, 0.0  ;;  %v1729_v60 = vadd.f32 %v423_v52, %v1169_v19 }
 0x135   :  { %v368_v18 = vmul.f32 0.5, %v367_v6  ;;  %445 = vadd.xlane.f32.xlu2 %v444_v13  ;;  %v412_v1 = vadd.f32 %v1365_v32, %v395_v37  ;;  %vm372_vm14 = vweird.f32 %v1041_v2  ;;  %vm291_vm15 = vweird.f32 %v1666_v36 }
 0x136   :  { %v288_v11 = vmul.f32 0.5, %v287_v41  ;;  %2401 = vst [vmem:[#allocation3_spill] sm:$0xff] %v1729_v60  ;;  %v403_v33 = vmul.f32 %v1362_v31, %v386_v17  ;;  %vm292_vm1 = vweird.f32 %v1043_v35  ;;  %v1735_v9 = vadd.f32 %v411_v39, %v1174_v20 }
 0x137   :  { %v369_v3 = vsub.f32 1.5, %v368_v18  ;;  %457 = vadd.xlane.f32.xlu0 %v456_v5  ;;  %vm371_vm2 = vweird.f32 %v1654_v15  ;;  %v483_v51 = vsel %vm31_vm0, %v1729_v60, 0.0  ;;  %v1741_v43 = vadd.f32 %v412_v1, %v1185_v24  ;;  %vm293_vm4 = vmor %vm291_vm15, %vm292_vm1 }
 0x138   :  { %v289_v28 = vsub.f32 1.5, %v288_v11  ;;  %vm373_vm3 = vmor %vm371_vm2, %vm372_vm14  ;;  %v420_v8 = vadd.f32 %v1365_v32, %v403_v33  ;;  %v447_v55 = vsel %vm31_vm0, %v1735_v9, 0.0 }
 0x139   :  { %v370_v21 = vmul.f32 %v1041_v2, %v369_v3  ;;  %460 = vadd.xlane.f32.xlu1 %v459_v14  ;;  %2402 = vst [vmem:[#allocation4_spill] sm:$0xff] %v1741_v43  ;;  %v450_v56 = vsel %vm31_vm0, %v1741_v43, 0.0 }
 0x13a   :  { %v290_v19 = vmul.f32 %v1043_v35, %v289_v28  ;;  %v1751_v54 = vadd.f32 %v420_v8, %v1190_v25 }
 0x13b   :  { %v374_v22 = vsel %vm373_vm3, %v1041_v2, %v370_v21 }
 0x13c   :  { %v390_v36 = vmul.f32 %v374_v22, %v1310_v10  ;;  %v294_v20 = vsel %vm293_vm4, %v1043_v35, %v290_v19  ;;  %2403 = vst [vmem:[#allocation5_spill] sm:$0xff] %v1751_v54  ;;  %v474_v58 = vsel %vm31_vm0, %v1751_v54, 0.0 }
 0x13d   :  { %v382_v15 = vmul.f32 %v294_v20, %v1318_v27  ;;  %484 = vadd.xlane.f32.xlu2 %v483_v51 }
 0x13e   :  { %v407_v24 = vmul.f32 %v1362_v31, %v390_v36 }
 0x13f   :  { %448 = vadd.xlane.f32.xlu0 %v447_v55  ;;  %v399_v62 = vmul.f32 %v1362_v31, %v382_v15 }
 0x140   :  { %v424_v10 = vadd.f32 %v1365_v32, %v407_v24 }
 0x141   :  { %451 = vadd.xlane.f32.xlu1 %v450_v56  ;;  %v416_v0 = vadd.f32 %v1365_v32, %v399_v62 }
 0x142   :  { %v1759_v27 = vadd.f32 %v424_v10, %v1195_v26 }
 0x143   :  { %v1765_v48 = vadd.f32 %v416_v0, %v1206_v30 }
 0x144   :  { %2404 = vst [vmem:[#allocation6_spill] sm:$0xff] %v1759_v27  ;;  %v486_v25 = vsel %vm31_vm0, %v1759_v27, 0.0 }
 0x145   :  { %475 = vadd.xlane.f32.xlu2 %v474_v58  ;;  %2405 = vst [vmem:[#allocation7_spill] sm:$0xff] %v1765_v48  ;;  %v462_v31 = vsel %vm31_vm0, %v1765_v48, 0.0 }
 0x147   :  { %487 = vadd.xlane.f32.xlu0 %v486_v25 }
 0x14d   :  { %463 = vadd.xlane.f32.xlu2 %v462_v31 }
 0x192   :  { %v443_v61 = vpop.xlane.xlu1 %442 }
 0x193   :  { %v489_v16 = vmul.f32 %v443_v61, %v1210_v38 }
 0x194   :  { %v467_v63 = vpop.xlane.xlu2 %466 }
 0x195   :  { %v1771_v26 = vsub.f32 %v1561_v46, %v489_v16  ;;  %v497_v32 = vmul.f32 %v467_v63, %v1210_v38 }
 0x197   :  { %v521_v2 = vmul.f32 %v1771_v26, %v1771_v26  ;;  %v1777_v30 = vsub.f32 %v1601_v50, %v497_v32 }
 0x199   :  { %v537_v49 = vsel %vm31_vm0, %v521_v2, 0.0  ;;  %v529_v35 = vmul.f32 %v1777_v30, %v1777_v30 }
 0x19a   :  { %v479_v57 = vpop.xlane.xlu0 %478  ;;  %538 = vadd.xlane.f32.xlu2 %v537_v49 }
 0x19b   :  { %v501_v53 = vmul.f32 %v479_v57, %v1210_v38  ;;  %v561_v12 = vsel %vm31_vm0, %v529_v35, 0.0 }
 0x19c   :  { %v482_v23 = vpop.xlane.xlu1 %481  ;;  %562 = vadd.xlane.f32.xlu0 %v561_v12 }
 0x19d   :  { %v1785_v44 = vsub.f32 %v1639_v59, %v501_v53  ;;  %v502_v37 = vmul.f32 %v482_v23, %v1210_v38 }
 0x19f   :  { %v1789_v40 = vsub.f32 %v1648_v42, %v502_v37  ;;  %v533_v6 = vmul.f32 %v1785_v44, %v1785_v44 }
 0x1a0   :  { %v455_v13 = vpop.xlane.xlu2 %454 }
 0x1a1   :  { %v493_v52 = vmul.f32 %v455_v13, %v1210_v38  ;;  %v573_v17 = vsel %vm31_vm0, %v533_v6, 0.0  ;;  %v534_v41 = vmul.f32 %v1789_v40, %v1789_v40 }
 0x1a2   :  { %v470_v5 = vpop.xlane.xlu0 %469  ;;  %574 = vadd.xlane.f32.xlu1 %v573_v17 }
 0x1a3   :  { %v1798_v18 = vsub.f32 %v1674_v4, %v493_v52  ;;  %v498_v14 = vmul.f32 %v470_v5, %v1210_v38  ;;  %v576_v39 = vsel %vm31_vm0, %v534_v41, 0.0 }
 0x1a4   :  { %577 = vadd.xlane.f32.xlu2 %v576_v39  ;;  %v473_v11 = vpop.xlane.xlu1 %472 }
 0x1a5   :  { %v1803_v1 = vsub.f32 %v1685_v34, %v498_v14  ;;  %v525_v33 = vmul.f32 %v1798_v18, %v1798_v18  ;;  %v499_v3 = vmul.f32 %v473_v11, %v1210_v38 }
 0x1a7   :  { %v549_v28 = vsel %vm31_vm0, %v525_v33, 0.0  ;;  %v1810_v21 = vsub.f32 %v1694_v29, %v499_v3  ;;  %v530_v19 = vmul.f32 %v1803_v1, %v1803_v1 }
 0x1a8   :  { %550 = vadd.xlane.f32.xlu0 %v549_v28  ;;  %v446_v51 = vpop.xlane.xlu2 %445 }
 0x1a9   :  { %v490_v8 = vmul.f32 %v446_v51, %v1210_v38  ;;  %v564_v22 = vsel %vm31_vm0, %v530_v19, 0.0  ;;  %v531_v36 = vmul.f32 %v1810_v21, %v1810_v21 }
 0x1aa   :  { %565 = vadd.xlane.f32.xlu1 %v564_v22  ;;  %v458_v20 = vpop.xlane.xlu0 %457 }
 0x1ab   :  { %v1819_v55 = vsub.f32 %v1705_v47, %v490_v8  ;;  %v494_v15 = vmul.f32 %v458_v20, %v1210_v38  ;;  %v567_v56 = vsel %vm31_vm0, %v531_v36, 0.0 }
 0x1ac   :  { %568 = vadd.xlane.f32.xlu2 %v567_v56  ;;  %v461_v24 = vpop.xlane.xlu1 %460 }
 0x1ad   :  { %v1824_v62 = vsub.f32 %v1716_v45, %v494_v15  ;;  %v522_v10 = vmul.f32 %v1819_v55, %v1819_v55  ;;  %v495_v58 = vmul.f32 %v461_v24, %v1210_v38 }
 0x1af   :  { %v540_v0 = vsel %vm31_vm0, %v522_v10, 0.0  ;;  %v1831_v25 = vsub.f32 %v1713_v7, %v495_v58  ;;  %v526_v31 = vmul.f32 %v1824_v62, %v1824_v62  ;;  %v830_v10 = vld [vmem:[%s2367_s2 + $0x18] sm:$0xff]  ;;  %v829_v58 = vld [vmem:[%s2367_s2 + $0x10] sm:$0xff] }
 0x1b0   :  { %541 = vadd.xlane.f32.xlu0 %v540_v0  ;;  %v485_v61 = vpop.xlane.xlu2 %484  ;;  %892 = vmatpush.msra.mxu0 %v830_v10  ;;  %v828_v0 = vld [vmem:[%s2367_s2 + $0x8] sm:$0xff] }
 0x1b1   :  { %v503_v16 = vmul.f32 %v485_v61, %v1210_v38  ;;  %v552_v63 = vsel %vm31_vm0, %v526_v31, 0.0  ;;  %v527_v32 = vmul.f32 %v1831_v25, %v1831_v25  ;;  %998 = vmatpush.msra.mxu2 %v830_v10  ;;  %997 = vmatpush.msra.mxu1 %v830_v10 }
 0x1b2   :  { %553 = vadd.xlane.f32.xlu1 %v552_v63  ;;  %v449_v2 = vpop.xlane.xlu0 %448  ;;  %999 = vmatpush.msra.mxu3 %v830_v10 }
 0x1b3   :  { %v1840_v49 = vsub.f32 %v1729_v60, %v503_v16  ;;  %v491_v57 = vmul.f32 %v449_v2, %v1210_v38  ;;  %v555_v35 = vsel %vm31_vm0, %v527_v32, 0.0  ;;  %893 = vmatpush.msra.mxu0 %v829_v58  ;;  %1001 = vmatpush.msra.mxu2 %v829_v58  ;;  %v827_v16 = vld [vmem:[%s2367_s2] sm:$0xff] }
 0x1b4   :  { %556 = vadd.xlane.f32.xlu2 %v555_v35  ;;  %v452_v53 = vpop.xlane.xlu1 %451  ;;  %1000 = vmatpush.msra.mxu1 %v829_v58 }
 0x1b5   :  { %v1845_v12 = vsub.f32 %v1735_v9, %v491_v57  ;;  %v535_v23 = vmul.f32 %v1840_v49, %v1840_v49  ;;  %v492_v37 = vmul.f32 %v452_v53, %v1210_v38  ;;  %1002 = vmatpush.msra.mxu3 %v829_v58  ;;  %894 = vmatpush.msra.mxu0 %v828_v0 }
 0x1b6   :  { %1004 = vmatpush.msra.mxu2 %v828_v0  ;;  %1003 = vmatpush.msra.mxu1 %v828_v0 }
 0x1b7   :  { %v579_v6 = vsel %vm31_vm0, %v535_v23, 0.0  ;;  %v1852_v13 = vsub.f32 %v1741_v43, %v492_v37  ;;  %v523_v52 = vmul.f32 %v1845_v12, %v1845_v12  ;;  %1005 = vmatpush.msra.mxu3 %v828_v0  ;;  %895 = vmatpush.msra.mxu0 %v827_v16 }
 0x1b8   :  { %580 = vadd.xlane.f32.xlu0 %v579_v6  ;;  %v476_v17 = vpop.xlane.xlu2 %475  ;;  %1007 = vmatpush.msra.mxu2 %v827_v16 }
 0x1b9   :  { %v500_v41 = vmul.f32 %v476_v17, %v1210_v38  ;;  %v543_v5 = vsel %vm31_vm0, %v523_v52, 0.0  ;;  %v524_v14 = vmul.f32 %v1852_v13, %v1852_v13  ;;  %1006 = vmatpush.msra.mxu1 %v827_v16  ;;  %1008 = vmatpush.msra.mxu3 %v827_v16 }
 0x1ba   :  { %544 = vadd.xlane.f32.xlu1 %v543_v5  ;;  %v488_v39 = vpop.xlane.xlu0 %487 }
 0x1bb   :  { %v1861_v11 = vsub.f32 %v1751_v54, %v500_v41  ;;  %v504_v33 = vmul.f32 %v488_v39, %v1210_v38  ;;  %v546_v3 = vsel %vm31_vm0, %v524_v14, 0.0 }
 0x1bc   :  { %547 = vadd.xlane.f32.xlu2 %v546_v3 }
 0x1bd   :  { %v1866_v28 = vsub.f32 %v1759_v27, %v504_v33  ;;  %v532_v19 = vmul.f32 %v1861_v11, %v1861_v11 }
 0x1bf   :  { %v570_v51 = vsel %vm31_vm0, %v532_v19, 0.0  ;;  %v536_v8 = vmul.f32 %v1866_v28, %v1866_v28 }
 0x1c0   :  { %571 = vadd.xlane.f32.xlu0 %v570_v51  ;;  %v464_v22 = vpop.xlane.xlu2 %463 }
 0x1c1   :  { %v496_v36 = vmul.f32 %v464_v22, %v1210_v38  ;;  %v582_v20 = vsel %vm31_vm0, %v536_v8, 0.0 }
 0x1c2   :  { %583 = vadd.xlane.f32.xlu1 %v582_v20 }
 0x1c3   :  { %v1876_v15 = vsub.f32 %v1765_v48, %v496_v36 }
 0x1c5   :  { %v528_v56 = vmul.f32 %v1876_v15, %v1876_v15 }
 0x1c7   :  { %v558_v24 = vsel %vm31_vm0, %v528_v56, 0.0 }
 0x1c8   :  { %559 = vadd.xlane.f32.xlu0 %v558_v24 }
 0x20d   :  { %v539_v31 = vpop.xlane.xlu2 %538 }
 0x20e   :  { %v585_v61 = vmul.f32 %v539_v31, %v1210_v38 }
 0x20f   :  { %v563_v63 = vpop.xlane.xlu0 %562 }
 0x210   :  { %v601_v32 = vadd.f32 1e-05, %v585_v61  ;;  %v593_v2 = vmul.f32 %v563_v63, %v1210_v38 }
 0x212   :  { %1044 = vrsqrt.f32 %v601_v32  ;;  %v609_v57 = vadd.f32 1e-05, %v593_v2  ;;  %vm623_vm6 = vweird.f32 %v601_v32 }
 0x214   :  { %1046 = vrsqrt.f32 %v609_v57  ;;  %vm703_vm9 = vweird.f32 %v609_v57 }
 0x215   :  { %v575_v35 = vpop.xlane.xlu1 %574 }
 0x216   :  { %v597_v53 = vmul.f32 %v575_v35, %v1210_v38 }
 0x217   :  { %v578_v23 = vpop.xlane.xlu2 %577 }
 0x218   :  { %v1045_v37 = vpop.eup %1044  ;;  %v598_v6 = vmul.f32 %v578_v23, %v1210_v38  ;;  %v1897_v52 = vadd.f32 1e-05, %v597_v53 }
 0x219   :  { %v618_v17 = vmul.f32 %v1045_v37, %v601_v32  ;;  %vm624_vm5 = vweird.f32 %v1045_v37 }
 0x21a   :  { %v1899_v41 = vadd.f32 1e-05, %v598_v6  ;;  %1048 = vrsqrt.f32 %v1897_v52  ;;  %v1902_v5 = vpop.eup %1046  ;;  %vm1921_vm7 = vmor %vm623_vm6, %vm624_vm5  ;;  %vm743_vm11 = vweird.f32 %v1897_v52 }
 0x21b   :  { %v619_v14 = vmul.f32 %v1045_v37, %v618_v17  ;;  %v551_v39 = vpop.xlane.xlu0 %550  ;;  %v698_v33 = vmul.f32 %v1902_v5, %v609_v57  ;;  %vm704_vm8 = vweird.f32 %v1902_v5 }
 0x21c   :  { %v589_v3 = vmul.f32 %v551_v39, %v1210_v38  ;;  %1050 = vrsqrt.f32 %v1899_v41  ;;  %vm1951_vm10 = vmor %vm703_vm9, %vm704_vm8  ;;  %vm753_vm12 = vweird.f32 %v1899_v41 }
 0x21d   :  { %v620_v19 = vmul.f32 0.5, %v619_v14  ;;  %v566_v51 = vpop.xlane.xlu1 %565  ;;  %v699_v8 = vmul.f32 %v1902_v5, %v698_v33 }
 0x21e   :  { %v1908_v22 = vadd.f32 1e-05, %v589_v3  ;;  %v594_v36 = vmul.f32 %v566_v51, %v1210_v38 }
 0x21f   :  { %v621_v20 = vsub.f32 1.5, %v620_v19  ;;  %v569_v56 = vpop.xlane.xlu2 %568  ;;  %v700_v10 = vmul.f32 0.5, %v699_v8 }
 0x220   :  { %v1911_v24 = vpop.eup %1048  ;;  %1052 = vrsqrt.f32 %v1908_v22  ;;  %v595_v58 = vmul.f32 %v569_v56, %v1210_v38  ;;  %v1917_v61 = vadd.f32 1e-05, %v594_v36  ;;  %v2408_v36 = vld [vmem:[#allocation2_spill] sm:$0xff]  ;;  %vm663_vm14 = vweird.f32 %v1908_v22 }
 0x221   :  { %v622_v0 = vmul.f32 %v1045_v37, %v621_v20  ;;  %v738_v31 = vmul.f32 %v1911_v24, %v1897_v52  ;;  %v701_v63 = vsub.f32 1.5, %v700_v10  ;;  %v1945_v20 = vperm.slane %v2408_v36, 2 }
 0x222   :  { %v1919_v16 = vpop.eup %1050  ;;  %v1925_v35 = vadd.f32 1e-05, %v595_v58  ;;  %vm744_vm13 = vweird.f32 %v1911_v24  ;;  %vm713_vm4 = vweird.f32 %v1917_v61 }
 0x223   :  { %v626_v53 = vsel %vm1921_vm7, %v1045_v37, %v622_v0  ;;  %v748_v32 = vmul.f32 %v1919_v16, %v1899_v41  ;;  %v739_v23 = vmul.f32 %v1911_v24, %v738_v31  ;;  %v542_v6 = vpop.xlane.xlu0 %541  ;;  %v702_v14 = vmul.f32 %v1902_v5, %v701_v63  ;;  %vm2011_vm2 = vmor %vm743_vm11, %vm744_vm13 }
 0x224   :  { %v586_v17 = vmul.f32 %v542_v6, %v1210_v38  ;;  %1054 = vrsqrt.f32 %v1925_v35  ;;  %v777_v8 = vmul.f32 %v626_v53, %v1771_v26  ;;  %v1970_v6 = vperm.slane %v2408_v36, 3 }
 0x225   :  { %v749_v39 = vmul.f32 %v1919_v16, %v748_v32  ;;  %v740_v33 = vmul.f32 0.5, %v739_v23  ;;  %1056 = vrsqrt.f32 %v1917_v61  ;;  %v554_v37 = vpop.xlane.xlu1 %553  ;;  %v706_v26 = vsel %vm1951_vm10, %v1902_v5, %v702_v14 }
 0x226   :  { %v1938_v3 = vpop.eup %1052  ;;  %v1940_v19 = vadd.f32 1e-05, %v586_v17  ;;  %v590_v51 = vmul.f32 %v554_v37, %v1210_v38  ;;  %v794_v23 = vmul.f32 %v1945_v20, %v777_v8  ;;  %vm754_vm1 = vweird.f32 %v1919_v16 }
 0x227   :  { %v658_v56 = vmul.f32 %v1938_v3, %v1908_v22  ;;  %v557_v10 = vpop.xlane.xlu2 %556  ;;  %v750_v63 = vmul.f32 0.5, %v749_v39  ;;  %v741_v2 = vsub.f32 1.5, %v740_v33  ;;  %vm664_vm15 = vweird.f32 %v1938_v3  ;;  %vm2041_vm7 = vmor %vm753_vm12, %vm754_vm1 }
 0x228   :  { %1058 = vrsqrt.f32 %v1940_v19  ;;  %v591_v0 = vmul.f32 %v557_v10, %v1210_v38  ;;  %v1957_v31 = vadd.f32 1e-05, %v590_v51  ;;  %v785_v51 = vmul.f32 %v706_v26, %v1777_v30  ;;  %vm2055_vm10 = vmor %vm663_vm14, %vm664_vm15 }
 0x229   :  { %v659_v57 = vmul.f32 %v1938_v3, %v658_v56  ;;  %v751_v8 = vsub.f32 1.5, %v750_v63  ;;  %v1984_v36 = vmul.f32 %v1911_v24, %v741_v2  ;;  %v811_v27 = vadd.f32 %v1970_v6, %v794_v23 }
 0x22a   :  { %v1963_v53 = vpop.eup %1054  ;;  %v1965_v32 = vadd.f32 1e-05, %v591_v0  ;;  %1060 = vrsqrt.f32 %v1957_v31  ;;  %v802_v23 = vmul.f32 %v1945_v20, %v785_v51  ;;  %vm633_vm3 = vweird.f32 %v1940_v19 }
 0x22b   :  { %v1972_v17 = vpop.eup %1056  ;;  %v660_v37 = vmul.f32 0.5, %v659_v57  ;;  %v718_v5 = vmul.f32 %v1963_v53, %v1925_v35  ;;  %v581_v14 = vpop.xlane.xlu0 %580  ;;  %981 = vmatmul.msk.f32.vlgmr.msra.gmra.mxu0 %vm31_vm0, %v811_v27  ;;  %v746_v52 = vsel %vm2011_vm2, %v1911_v24, %v1984_v36  ;;  %vm724_vm5 = vweird.f32 %v1963_v53 }
 0x22c   :  { %v708_v39 = vmul.f32 %v1972_v17, %v1917_v61  ;;  %v599_v33 = vmul.f32 %v581_v14, %v1210_v38  ;;  %1062 = vrsqrt.f32 %v1965_v32  ;;  %vm714_vm6 = vweird.f32 %v1972_v17 }
 0x22d   :  { %v719_v56 = vmul.f32 %v1963_v53, %v718_v5  ;;  %v661_v58 = vsub.f32 1.5, %v660_v37  ;;  %v545_v14 = vpop.xlane.xlu1 %544  ;;  %v2005_v5 = vmul.f32 %v1919_v16, %v751_v8  ;;  %v819_v8 = vadd.f32 %v1970_v6, %v802_v23  ;;  %vm2100_vm1 = vmor %vm713_vm4, %vm714_vm6 }
 0x22e   :  { %v1988_v10 = vpop.eup %1058  ;;  %v709_v0 = vmul.f32 %v1972_v17, %v708_v39  ;;  %v1991_v57 = vadd.f32 1e-05, %v599_v33  ;;  %vm723_vm9 = vweird.f32 %v1925_v35  ;;  %vm673_vm11 = vweird.f32 %v1957_v31 }
 0x22f   :  { %v628_v30 = vmul.f32 %v1988_v10, %v1940_v19  ;;  %v548_v26 = vpop.xlane.xlu2 %547  ;;  %v720_v2 = vmul.f32 0.5, %v719_v56  ;;  %v662_v51 = vmul.f32 %v1938_v3, %v661_v58  ;;  %v587_v58 = vmul.f32 %v545_v14, %v1210_v38  ;;  %989 = vmatmul.msk.f32.vlgmr.msra.gmra.mxu2 %vm31_vm0, %v819_v8  ;;  %vm2127_vm4 = vmor %vm723_vm9, %vm724_vm5 }
 0x230   :  { %v1999_v63 = vpop.eup %1060  ;;  %v710_v37 = vmul.f32 0.5, %v709_v0  ;;  %1064 = vrsqrt.f32 %v1991_v57  ;;  %v588_v56 = vmul.f32 %v548_v26, %v1210_v38  ;;  %vm634_vm8 = vweird.f32 %v1988_v10 }
 0x231   :  { %v629_v33 = vmul.f32 %v1988_v10, %v628_v30  ;;  %v668_v27 = vmul.f32 %v1999_v63, %v1957_v31  ;;  %v721_v60 = vsub.f32 1.5, %v720_v2  ;;  %v756_v41 = vsel %vm2041_vm7, %v1919_v16, %v2005_v5  ;;  %vm2081_vm13 = vmor %vm633_vm3, %vm634_vm8 }
 0x232   :  { %v2027_v0 = vpop.eup %1062  ;;  %v711_v54 = vsub.f32 1.5, %v710_v37  ;;  %v2047_v2 = vadd.f32 1e-05, %v588_v56  ;;  %v666_v22 = vsel %vm2055_vm10, %v1938_v3, %v662_v51  ;;  %vm683_vm12 = vweird.f32 %v1965_v32 }
 0x233   :  { %v630_v30 = vmul.f32 0.5, %v629_v33  ;;  %v669_v48 = vmul.f32 %v1999_v63, %v668_v27  ;;  %v572_v43 = vpop.xlane.xlu0 %571  ;;  %v678_v24 = vmul.f32 %v2027_v0, %v1965_v32  ;;  %v2067_v33 = vadd.f32 1e-05, %v587_v58 }
 0x234   :  { %v596_v36 = vmul.f32 %v572_v43, %v1210_v38  ;;  %v712_v8 = vmul.f32 %v1972_v17, %v711_v54  ;;  %v2086_v58 = vmul.f32 %v1963_v53, %v721_v60  ;;  %vm763_vm14 = vweird.f32 %v1991_v57 }
 0x235   :  { %v631_v37 = vsub.f32 1.5, %v630_v30  ;;  %v670_v14 = vmul.f32 0.5, %v669_v48  ;;  %v679_v39 = vmul.f32 %v2027_v0, %v678_v24  ;;  %vm674_vm15 = vweird.f32 %v1999_v63  ;;  %v584_v54 = vpop.xlane.xlu1 %583 }
 0x236   :  { %v2049_v23 = vpop.eup %1064  ;;  %v2065_v48 = vadd.f32 1e-05, %v596_v36  ;;  %vm684_vm2 = vweird.f32 %v2027_v0  ;;  %v789_v43 = vmul.f32 %v746_v52, %v1785_v44  ;;  %v600_v61 = vmul.f32 %v584_v54, %v1210_v38  ;;  %vm2144_vm5 = vmor %vm673_vm11, %vm674_vm15 }
 0x237   :  { %v632_v27 = vmul.f32 %v1988_v10, %v631_v37  ;;  %v758_v56 = vmul.f32 %v2049_v23, %v1991_v57  ;;  %v680_v3 = vmul.f32 0.5, %v679_v39  ;;  %v671_v24 = vsub.f32 1.5, %v670_v14  ;;  %vm2162_vm6 = vmor %vm683_vm12, %vm684_vm2 }
 0x238   :  { %1066 = vrsqrt.f32 %v2065_v48  ;;  %v716_v37 = vsel %vm2100_vm1, %v1972_v17, %v712_v8  ;;  %vm764_vm3 = vweird.f32 %v2049_v23  ;;  %v2134_v8 = vadd.f32 1e-05, %v600_v61 }
 0x239   :  { %v636_v51 = vsel %vm2081_vm13, %v1988_v10, %v632_v27  ;;  %v759_v19 = vmul.f32 %v2049_v23, %v758_v56  ;;  %1068 = vrsqrt.f32 %v2047_v2  ;;  %v681_v36 = vsub.f32 1.5, %v680_v3  ;;  %vm2175_vm9 = vmor %vm763_vm14, %vm764_vm3 }
 0x23a   :  { %1070 = vrsqrt.f32 %v2067_v33  ;;  %v781_v10 = vmul.f32 %v666_v22, %v1798_v18  ;;  %v778_v30 = vmul.f32 %v636_v51, %v1819_v55  ;;  %v672_v17 = vmul.f32 %v1999_v63, %v671_v24 }
 0x23b   :  { %v760_v14 = vmul.f32 0.5, %v759_v19  ;;  %v560_v39 = vpop.xlane.xlu0 %559  ;;  %v2117_v18 = vmul.f32 %v2027_v0, %v681_v36  ;;  %v806_v22 = vmul.f32 %v1945_v20, %v789_v43  ;;  %v786_v36 = vmul.f32 %v716_v37, %v1803_v1 }
 0x23c   :  { %v798_v27 = vmul.f32 %v1945_v20, %v781_v10  ;;  %v592_v56 = vmul.f32 %v560_v39, %v1210_v38  ;;  %v795_v54 = vmul.f32 %v1945_v20, %v778_v30  ;;  %vm733_vm8 = vweird.f32 %v2065_v48 }
 0x23d   :  { %v761_v3 = vsub.f32 1.5, %v760_v14  ;;  %v823_v60 = vadd.f32 %v1970_v6, %v806_v22  ;;  %v726_v14 = vsel %vm2127_vm4, %v1963_v53, %v2086_v58  ;;  %v686_v32 = vsel %vm2162_vm6, %v2027_v0, %v2117_v18 }
 0x23e   :  { %v2121_v44 = vpop.eup %1066  ;;  %v815_v38 = vadd.f32 %v1970_v6, %v798_v27  ;;  %v2132_v55 = vadd.f32 1e-05, %v592_v56  ;;  %v676_v58 = vsel %vm2144_vm5, %v1999_v63, %v672_v17  ;;  %vm643_vm10 = vweird.f32 %v2067_v33 }
 0x23f   :  { %v2137_v51 = vpop.eup %1068  ;;  %v762_v19 = vmul.f32 %v2049_v23, %v761_v3  ;;  %v728_v24 = vmul.f32 %v2121_v44, %v2065_v48  ;;  %993 = vmatmul.msk.f32.vlgmr.msra.gmra.mxu3 %vm31_vm0, %v823_v60  ;;  %v812_v0 = vadd.f32 %v1970_v6, %v795_v54  ;;  %v803_v27 = vmul.f32 %v1945_v20, %v786_v36 }
 0x240   :  { %v2152_v10 = vpop.eup %1070  ;;  %v648_v1 = vmul.f32 %v2137_v51, %v2047_v2  ;;  %985 = vmatmul.msk.f32.vlgmr.msra.gmra.mxu1 %vm31_vm0, %v815_v38  ;;  %1072 = vrsqrt.f32 %v2132_v55  ;;  %v790_v56 = vmul.f32 %v756_v41, %v1789_v40  ;;  %vm734_vm11 = vweird.f32 %v2121_v44 }
 0x241   :  { %v729_v37 = vmul.f32 %v2121_v44, %v728_v24  ;;  %v638_v43 = vmul.f32 %v2152_v10, %v2067_v33  ;;  %v766_v57 = vsel %vm2175_vm9, %v2049_v23, %v762_v19  ;;  %1074 = vrsqrt.f32 %v2134_v8  ;;  %982 = vmatmul.msk.f32.gmra.mxu0 %vm31_vm0, %v812_v0  ;;  %vm2222_vm13 = vmor %vm733_vm8, %vm734_vm11 }
 0x242   :  { %v649_v39 = vmul.f32 %v2137_v51, %v648_v1  ;;  %v782_v30 = vmul.f32 %v676_v58, %v1824_v62  ;;  %v787_v3 = vmul.f32 %v726_v14, %v1810_v21  ;;  %v820_v22 = vadd.f32 %v1970_v6, %v803_v27 }
 0x243   :  { %v730_v63 = vmul.f32 0.5, %v729_v37  ;;  %v639_v61 = vmul.f32 %v2152_v10, %v638_v43  ;;  %v807_v52 = vmul.f32 %v1945_v20, %v790_v56  ;;  %vm654_vm7 = vweird.f32 %v2137_v51 }
 0x244   :  { %v650_v23 = vmul.f32 0.5, %v649_v39  ;;  %v799_v40 = vmul.f32 %v1945_v20, %v782_v30  ;;  %v791_v16 = vmul.f32 %v766_v57, %v1840_v49  ;;  %vm644_vm12 = vweird.f32 %v2152_v10  ;;  %990 = vmatmul.msk.f32.gmra.mxu2 %vm31_vm0, %v820_v22 }
 0x245   :  { %v731_v18 = vsub.f32 1.5, %v730_v63  ;;  %v640_v17 = vmul.f32 0.5, %v639_v61  ;;  %v824_v19 = vadd.f32 %v1970_v6, %v807_v52  ;;  %v804_v24 = vmul.f32 %v1945_v20, %v787_v3  ;;  %vm645_vm15 = vmor %vm643_vm10, %vm644_vm12 }
 0x246   :  { %v1073_v26 = vpop.eup %1072  ;;  %v651_v38 = vsub.f32 1.5, %v650_v23  ;;  %v816_v35 = vadd.f32 %v1970_v6, %v799_v40  ;;  %vm653_vm14 = vweird.f32 %v2047_v2  ;;  %v808_v31 = vmul.f32 %v1945_v20, %v791_v16 }
 0x247   :  { %v732_v5 = vmul.f32 %v2121_v44, %v731_v18  ;;  %v641_v41 = vsub.f32 1.5, %v640_v17  ;;  %v688_v21 = vmul.f32 %v1073_v26, %v2132_v55  ;;  %v1075_v62 = vpop.eup %1074  ;;  %994 = vmatmul.msk.f32.gmra.mxu3 %vm31_vm0, %v824_v19  ;;  %v783_v1 = vmul.f32 %v686_v32, %v1831_v25  ;;  %vm2246_vm1 = vmor %vm653_vm14, %vm654_vm7 }
 0x248   :  { %v652_v49 = vmul.f32 %v2137_v51, %v651_v38  ;;  %v768_v48 = vmul.f32 %v1075_v62, %v2134_v8  ;;  %986 = vmatmul.msk.f32.gmra.mxu1 %vm31_vm0, %v816_v35  ;;  %vm694_vm2 = vweird.f32 %v1073_v26  ;;  %v821_v33 = vadd.f32 %v1970_v6, %v804_v24 }
 0x249   :  { %v736_v60 = vsel %vm2222_vm13, %v2121_v44, %v732_v5  ;;  %v642_v36 = vmul.f32 %v2152_v10, %v641_v41  ;;  %v689_v14 = vmul.f32 %v1073_v26, %v688_v21  ;;  %v800_v57 = vmul.f32 %v1945_v20, %v783_v1 }
 0x24a   :  { %v769_v58 = vmul.f32 %v1075_v62, %v768_v48  ;;  %v788_v37 = vmul.f32 %v736_v60, %v1861_v11  ;;  %v656_v25 = vsel %vm2246_vm1, %v2137_v51, %v652_v49  ;;  %vm693_vm3 = vweird.f32 %v2132_v55 }
 0x24b   :  { %v646_v44 = vsel %vm645_vm15, %v2152_v10, %v642_v36  ;;  %v690_v53 = vmul.f32 0.5, %v689_v14  ;;  %v825_v11 = vadd.f32 %v1970_v6, %v808_v31  ;;  %vm774_vm4 = vweird.f32 %v1075_v62  ;;  %vm695_vm5 = vmor %vm693_vm3, %vm694_vm2 }
 0x24c   :  { %v779_v43 = vmul.f32 %v646_v44, %v1845_v12  ;;  %v770_v32 = vmul.f32 0.5, %v769_v58  ;;  %991 = vmatmul.msk.f32.gmra.mxu2 %vm31_vm0, %v821_v33  ;;  %v805_v12 = vmul.f32 %v1945_v20, %v788_v37  ;;  %v780_v61 = vmul.f32 %v656_v25, %v1852_v13 }
 0x24d   :  { %v691_v10 = vsub.f32 1.5, %v690_v53  ;;  %vm773_vm6 = vweird.f32 %v2134_v8  ;;  %v817_v55 = vadd.f32 %v1970_v6, %v800_v57 }
 0x24e   :  { %v796_v39 = vmul.f32 %v1945_v20, %v779_v43  ;;  %v771_v63 = vsub.f32 1.5, %v770_v32  ;;  %vm775_vm8 = vmor %vm773_vm6, %vm774_vm4  ;;  %v822_v3 = vadd.f32 %v1970_v6, %v805_v12  ;;  %v797_v13 = vmul.f32 %v1945_v20, %v780_v61 }
 0x24f   :  { %v692_v0 = vmul.f32 %v1073_v26, %v691_v10  ;;  %995 = vmatmul.msk.f32.gmra.mxu3 %vm31_vm0, %v825_v11  ;;  %v2434_v11 = vld [vmem:[#allocation4_spill] sm:$0xff] }
 0x250   :  { %v813_v51 = vadd.f32 %v1970_v6, %v796_v39  ;;  %v772_v56 = vmul.f32 %v1075_v62, %v771_v63  ;;  %987 = vmatmul.msk.f32.gmra.mxu1 %vm31_vm0, %v817_v55  ;;  %v814_v52 = vadd.f32 %v1970_v6, %v797_v13  ;;  %v2435_v63 = vld [vmem:[#allocation7_spill] sm:$0xff]  ;;  %v2437_v55 = vld [vmem:[#allocation6_spill] sm:$0xff] }
 0x251   :  { %v696_v27 = vsel %vm695_vm5, %v1073_v26, %v692_v0 }
 0x252   :  { %983 = vmatmul.msk.f32.gmra.mxu0 %vm31_vm0, %v813_v51  ;;  %v784_v23 = vmul.f32 %v696_v27, %v1876_v15  ;;  %v776_v30 = vsel %vm775_vm8, %v1075_v62, %v772_v56  ;;  %v2436_v51 = vld [vmem:[#allocation5_spill] sm:$0xff] }
 0x253   :  { %v792_v8 = vmul.f32 %v776_v30, %v1866_v28  ;;  %v1076_v28 = vld [vmem:[%s2366_s1] sm:$0xff] }
 0x254   :  { %v801_v18 = vmul.f32 %v1945_v20, %v784_v23  ;;  %992 = vmatmul.msk.f32.gmra.mxu2 %vm31_vm0, %v822_v3  ;;  %v831_v26 = vperm.slane %v1076_v28, 4 }
 0x255   :  { %v809_v17 = vmul.f32 %v1945_v20, %v792_v8 }
 0x256   :  { %v818_v22 = vadd.f32 %v1970_v6, %v801_v18 }
 0x257   :  { %v826_v15 = vadd.f32 %v1970_v6, %v809_v17 }
 0x258   :  { %988 = vmatmul.msk.f32.gmra.mxu1 %vm31_vm0, %v818_v22 }
 0x259   :  { %996 = vmatmul.msk.f32.gmra.mxu3 %vm31_vm0, %v826_v15 }
 0x25a   :  { %984 = vmatmul.msk.f32.gmra.mxu0 %vm31_vm0, %v814_v52 }
 0x2a8   :  { %v897_v20 = vpop.f32.mrf.mxu0 }
 0x2a9   :  { %v898_v38 = vadd.f32 %v897_v20, %v831_v26 }
 0x2ab   :  { %v945_v40 = vadd.f32 %v898_v38, %v1561_v46 }
 0x2ad   :  { %961 = vst.msk [vmem:[%s2368_s3] sm:$0xff] %vm31_vm0, %v945_v40 }
 0x2b2   :  { %v921_v6 = vpop.f32.mrf.mxu2 }
 0x2b3   :  { %v922_v16 = vadd.f32 %v921_v6, %v831_v26 }
 0x2b5   :  { %v953_v5 = vadd.f32 %v922_v16, %v1601_v50 }
 0x2b7   :  { %969 = vst.msk [vmem:[%s2368_s3 + $0x40] sm:$0xff] %vm31_vm0, %v953_v5 }
 0x2bd   :  { %v909_v41 = vpop.f32.mrf.mxu1 }
 0x2be   :  { %v910_v21 = vadd.f32 %v909_v41, %v831_v26  ;;  %v900_v54 = vpop.f32.mrf.mxu0 }
 0x2bf   :  { %v901_v46 = vadd.f32 %v900_v54, %v831_v26 }
 0x2c0   :  { %v949_v62 = vadd.f32 %v910_v21, %v1674_v4 }
 0x2c1   :  { %v946_v19 = vadd.f32 %v901_v46, %v1705_v47 }
 0x2c2   :  { %965 = vst.msk [vmem:[%s2368_s3 + $0x20] sm:$0xff] %vm31_vm0, %v949_v62  ;;  %v933_v49 = vpop.f32.mrf.mxu3 }
 0x2c3   :  { %v934_v50 = vadd.f32 %v933_v49, %v831_v26  ;;  %962 = vst.msk [vmem:[%s2368_s3 + $0x8] sm:$0xff] %vm31_vm0, %v946_v19 }
 0x2c5   :  { %v957_v35 = vadd.f32 %v934_v50, %v1639_v59  ;;  %v912_v24 = vpop.f32.mrf.mxu1 }
 0x2c6   :  { %v913_v4 = vadd.f32 %v912_v24, %v831_v26 }
 0x2c7   :  { %973 = vst.msk [vmem:[%s2368_s3 + $0x60] sm:$0xff] %vm31_vm0, %v957_v35  ;;  %v924_v60 = vpop.f32.mrf.mxu2 }
 0x2c8   :  { %v950_v36 = vadd.f32 %v913_v4, %v1716_v45  ;;  %v925_v14 = vadd.f32 %v924_v60, %v831_v26 }
 0x2ca   :  { %966 = vst.msk [vmem:[%s2368_s3 + $0x28] sm:$0xff] %vm31_vm0, %v950_v36  ;;  %v954_v47 = vadd.f32 %v925_v14, %v1685_v34  ;;  %v936_v48 = vpop.f32.mrf.mxu3 }
 0x2cb   :  { %v937_v59 = vadd.f32 %v936_v48, %v831_v26 }
 0x2cc   :  { %970 = vst.msk [vmem:[%s2368_s3 + $0x48] sm:$0xff] %vm31_vm0, %v954_v47 }
 0x2cd   :  { %v958_v1 = vadd.f32 %v937_v59, %v1648_v42  ;;  %v915_v45 = vpop.f32.mrf.mxu1 }
 0x2ce   :  { %v916_v53 = vadd.f32 %v915_v45, %v831_v26 }
 0x2cf   :  { %v903_v31 = vpop.f32.mrf.mxu0  ;;  %974 = vst.msk [vmem:[%s2368_s3 + $0x68] sm:$0xff] %vm31_vm0, %v958_v1  ;;  %v927_v58 = vpop.f32.mrf.mxu2 }
 0x2d0   :  { %v904_v44 = vadd.f32 %v903_v31, %v831_v26  ;;  %v928_v37 = vadd.f32 %v927_v58, %v831_v26  ;;  %v951_v2 = vadd.f32 %v916_v53, %v1713_v7 }
 0x2d2   :  { %v947_v34 = vadd.f32 %v904_v44, %v1735_v9  ;;  %v955_v42 = vadd.f32 %v928_v37, %v1694_v29  ;;  %v939_v33 = vpop.f32.mrf.mxu3  ;;  %967 = vst.msk [vmem:[%s2368_s3 + $0x30] sm:$0xff] %vm31_vm0, %v951_v2  ;;  %v2433_v9 = vld [vmem:[#allocation3_spill] sm:$0xff] }
 0x2d3   :  { %v940_v43 = vadd.f32 %v939_v33, %v831_v26 }
 0x2d4   :  { %963 = vst.msk [vmem:[%s2368_s3 + $0x10] sm:$0xff] %vm31_vm0, %v947_v34 }
 0x2d5   :  { %971 = vst.msk [vmem:[%s2368_s3 + $0x50] sm:$0xff] %vm31_vm0, %v955_v42  ;;  %v959_v25 = vadd.f32 %v940_v43, %v2433_v9  ;;  %v918_v32 = vpop.f32.mrf.mxu1 }
 0x2d6   :  { %v919_v57 = vadd.f32 %v918_v32, %v831_v26 }
 0x2d7   :  { %v906_v7 = vpop.f32.mrf.mxu0  ;;  %975 = vst.msk [vmem:[%s2368_s3 + $0x70] sm:$0xff] %vm31_vm0, %v959_v25  ;;  %v930_v29 = vpop.f32.mrf.mxu2 }
 0x2d8   :  { %v907_v10 = vadd.f32 %v906_v7, %v831_v26  ;;  %v931_v0 = vadd.f32 %v930_v29, %v831_v26  ;;  %v952_v12 = vadd.f32 %v919_v57, %v2435_v63 }
 0x2da   :  { %v948_v39 = vadd.f32 %v907_v10, %v2434_v11  ;;  %v956_v61 = vadd.f32 %v931_v0, %v2436_v51  ;;  %968 = vst.msk [vmem:[%s2368_s3 + $0x38] sm:$0xff] %vm31_vm0, %v952_v12 }
 0x2dc   :  { %964 = vst.msk [vmem:[%s2368_s3 + $0x18] sm:$0xff] %vm31_vm0, %v948_v39  ;;  %v942_v27 = vpop.f32.mrf.mxu3 }
 0x2dd   :  { %v943_v56 = vadd.f32 %v942_v27, %v831_v26  ;;  %972 = vst.msk [vmem:[%s2368_s3 + $0x58] sm:$0xff] %vm31_vm0, %v956_v61 }
 0x2df   :  { %v960_v23 = vadd.f32 %v943_v56, %v2437_v55 }
 0x2e1   :  { %976 = vst.msk [vmem:[%s2368_s3 + $0x78] sm:$0xff] %vm31_vm0, %v960_v23 }

</bundles_post_ra>
